<compile_context>
chip_gen: v6e
topology: v6e:2x2x1
jax: 0.10.0
libtpu: 0.0.40
codegen_flags: <defaults>
</compile_context>

<pallas_src>
import math
import jax
import jax.numpy as jnp
from jax.experimental import pallas as pl
from jax.experimental.pallas import tpu as pltpu

EMBEDDING_DIM = 64
LN_EPS = 1e-5            # PyTorch nn.LayerNorm default eps


def layernorm_kernel(x_ref, g_ref, b_ref, o_ref):
    x = x_ref[...]                                            # [rows, E] f32
    mu = jnp.mean(x, axis=-1, keepdims=True)                  # [rows, 1]
    xc = x - mu
    var = jnp.mean(xc * xc, axis=-1, keepdims=True)           # biased var (matches PyTorch)
    inv = jax.lax.rsqrt(var + LN_EPS)                         # EUP rsqrt
    o_ref[...] = xc * inv * g_ref[...] + b_ref[...]           # lane-dense store [rows, E]


def _round_up(a, b):
    return ((a + b - 1) // b) * b


def normalization_forward(x, gamma, beta):
    """LayerNorm over the last dim of x (any leading shape), gamma/beta: [E]."""
    orig_shape = x.shape
    E = orig_shape[-1]
    x2 = x.reshape(-1, E).astype(jnp.float32)                 # flatten leading dims -> rows
    R = x2.shape[0]

    # Row blocking: sublane-aligned, capped so big inputs pipeline through VMEM.
    block_rows = min(512, _round_up(R, 8))
    Rp = _round_up(R, block_rows)
    if Rp != R:
        x2 = jnp.pad(x2, ((0, Rp - R), (0, 0)))               # padded rows are harmless

    g2 = gamma.reshape(1, E).astype(jnp.float32)
    b2 = beta.reshape(1, E).astype(jnp.float32)

    out = pl.pallas_call(
        layernorm_kernel,
        out_shape=jax.ShapeDtypeStruct((Rp, E), jnp.float32),
        grid=(Rp // block_rows,),
        in_specs=[
            pl.BlockSpec((block_rows, E), lambda i: (i, 0)),
            pl.BlockSpec((1, E), lambda i: (0, 0)),
            pl.BlockSpec((1, E), lambda i: (0, 0)),
        ],
        out_specs=pl.BlockSpec((block_rows, E), lambda i: (i, 0)),
        compiler_params=pltpu.CompilerParams(
            dimension_semantics=("parallel",)),
    )(x2, g2, b2)

    return out[:R].reshape(orig_shape)


def _layernorm_reference(x, gamma, beta):
    mu = jnp.mean(x, axis=-1, keepdims=True)
    var = jnp.mean(jnp.square(x - mu), axis=-1, keepdims=True)
    return (x - mu) * jax.lax.rsqrt(var + LN_EPS) * gamma + beta


if __name__ == "__main__":
    key = jax.random.PRNGKey(0)
    kx, kg, kb = jax.random.split(key, 3)

    B, S, E = 2, 16, EMBEDDING_DIM
    x = jax.random.normal(kx, (B, S, E), jnp.float32)
    # nn.LayerNorm initializes weight=1, bias=0; use non-trivial values to exercise the
    # affine path while keeping identical semantics (they are just the module's params).
    gamma = 1.0 + 0.1 * jax.random.normal(kg, (E,), jnp.float32)
    beta = 0.1 * jax.random.normal(kb, (E,), jnp.float32)

    y = normalization_forward(x, gamma, beta)
    jax.block_until_ready(y)

    y_ref = _layernorm_reference(x, gamma, beta)
    assert y.shape == (B, S, E)
    assert bool(jnp.all(jnp.isfinite(y)))
    assert bool(jnp.max(jnp.abs(y - y_ref)) < 1e-4)
    print("KERNEL_OK")
</pallas_src>

<mosaic_0001>
module attributes {stable_mosaic.version = 11 : i64} {
  func.func @layernorm_kernel(%arg0: i32, %arg1: memref<32x64xf32, #tpu.memory_space<vmem>>, %arg2: memref<1x64xf32, #tpu.memory_space<vmem>>, %arg3: memref<1x64xf32, #tpu.memory_space<vmem>>, %arg4: memref<32x64xf32, #tpu.memory_space<vmem>>) attributes {dimension_semantics = [#tpu.dimension_semantics<parallel>], iteration_bounds = array<i64: 1>, scalar_prefetch = 0 : i64, scratch_operands = 0 : i64, tpu.core_type = #tpu.core_type<tc>, window_params = [{transform_indices = @transform_0, window_bounds = array<i64: 32, 64>}, {pipeline_mode = #tpu.pipeline_mode<synchronous>, transform_indices = @transform_1, window_bounds = array<i64: 1, 64>}, {pipeline_mode = #tpu.pipeline_mode<synchronous>, transform_indices = @transform_2, window_bounds = array<i64: 1, 64>}, {transform_indices = @transform_3, window_bounds = array<i64: 32, 64>}]} {
    %c0 = arith.constant 0 : index
    %c0_0 = arith.constant 0 : index
    %0 = vector.load %arg1[%c0, %c0_0] : memref<32x64xf32, #tpu.memory_space<vmem>>, vector<32x64xf32>
    %cst = arith.constant dense<0.000000e+00> : vector<32xf32>
    %1 = vector.multi_reduction <add>, %0, %cst [1] : vector<32x64xf32> to vector<32xf32>
    %2 = vector.shape_cast %1 : vector<32xf32> to vector<32x1xf32>
    %cst_1 = arith.constant 6.400000e+01 : f32
    %3 = vector.broadcast %cst_1 : f32 to vector<32x1xf32>
    %4 = arith.divf %2, %3 : vector<32x1xf32>
    %5 = vector.broadcast %4 : vector<32x1xf32> to vector<32x64xf32>
    %6 = arith.subf %0, %5 : vector<32x64xf32>
    %7 = arith.mulf %6, %6 : vector<32x64xf32>
    %cst_2 = arith.constant dense<0.000000e+00> : vector<32xf32>
    %8 = vector.multi_reduction <add>, %7, %cst_2 [1] : vector<32x64xf32> to vector<32xf32>
    %9 = vector.shape_cast %8 : vector<32xf32> to vector<32x1xf32>
    %cst_3 = arith.constant 6.400000e+01 : f32
    %10 = vector.broadcast %cst_3 : f32 to vector<32x1xf32>
    %11 = arith.divf %9, %10 : vector<32x1xf32>
    %cst_4 = arith.constant 9.99999974E-6 : f32
    %12 = vector.broadcast %cst_4 : f32 to vector<32x1xf32>
    %13 = arith.addf %11, %12 : vector<32x1xf32>
    %14 = math.rsqrt %13 : vector<32x1xf32>
    %15 = vector.broadcast %14 : vector<32x1xf32> to vector<32x64xf32>
    %16 = arith.mulf %6, %15 : vector<32x64xf32>
    %c0_5 = arith.constant 0 : index
    %c0_6 = arith.constant 0 : index
    %17 = vector.load %arg2[%c0_5, %c0_6] : memref<1x64xf32, #tpu.memory_space<vmem>>, vector<1x64xf32>
    %18 = vector.broadcast %17 : vector<1x64xf32> to vector<32x64xf32>
    %19 = arith.mulf %16, %18 : vector<32x64xf32>
    %c0_7 = arith.constant 0 : index
    %c0_8 = arith.constant 0 : index
    %20 = vector.load %arg3[%c0_7, %c0_8] : memref<1x64xf32, #tpu.memory_space<vmem>>, vector<1x64xf32>
    %21 = vector.broadcast %20 : vector<1x64xf32> to vector<32x64xf32>
    %22 = arith.addf %19, %21 : vector<32x64xf32>
    %c0_9 = arith.constant 0 : index
    %c0_10 = arith.constant 0 : index
    %23 = vector.load %arg4[%c0_9, %c0_10] : memref<32x64xf32, #tpu.memory_space<vmem>>, vector<32x64xf32>
    tpu.vector_store %arg4[%c0_9, %c0_10], %22 {strides = array<i32>} : memref<32x64xf32, #tpu.memory_space<vmem>>, vector<32x64xf32>,
    return
  }
  func.func @transform_0(%arg0: i32) -> (i32, i32) {
    %c0_i32 = arith.constant 0 : i32
    %c0_i32_0 = arith.constant 0 : i32
    return %arg0, %c0_i32 : i32, i32
  }
  func.func @transform_1(%arg0: i32) -> (i32, i32) {
    %c0_i32 = arith.constant 0 : i32
    %c0_i32_0 = arith.constant 0 : i32
    %c0_i32_1 = arith.constant 0 : i32
    return %c0_i32, %c0_i32_0 : i32, i32
  }
  func.func @transform_2(%arg0: i32) -> (i32, i32) {
    %c0_i32 = arith.constant 0 : i32
    %c0_i32_0 = arith.constant 0 : i32
    %c0_i32_1 = arith.constant 0 : i32
    return %c0_i32, %c0_i32_0 : i32, i32
  }
  func.func @transform_3(%arg0: i32) -> (i32, i32) {
    %c0_i32 = arith.constant 0 : i32
    %c0_i32_0 = arith.constant 0 : i32
    return %arg0, %c0_i32 : i32, i32
  }
}

</mosaic_0001>

<bundles_post_ra>
// kernel: tpu_custom_call.1
= control target key start
LH: loop header
LB: loop body
LE: loop exit
PB: predicated region body
PF: predicated region fallthrough
CT: control target
= control target key end

     0   :  { %8 = vsyncpa [#allocation3], 0  ;;  %s242_s0 = inlined_call_operand.hbm [shape: f32[32,64], index: 0, kind: input, shape index: {}]   ;;  %s243_s1 = inlined_call_operand.vmem [shape: f32[1,64], index: 1, kind: input, shape index: {}]   ;;  %s244_s2 = inlined_call_operand.vmem [shape: f32[1,64], index: 2, kind: input, shape index: {}]   ;;  %s245_s3 = inlined_call_operand.hbm [shape: f32[32,64], index: 3, kind: output, shape index: {}]  }
   0x1   :  { %9 = vsyncpa [#allocation4], 0  ;;  %s188_s12 = smov [#allocation2]  }
   0x2   :  { %s15_s13 = sshll.u32 %s188_s12, 4  ;;  %s16_s13 = int_to_ptr.vmem [resolvable:$true] %s15_s13 }
   0x3   :  { %s152_s14 = scalar_lea.vmem %s16_s13, 512  ;;  %p157_p1 = scmp.lt.s32.totalorder %s16_s13, %s16_s13 }
   0x4   :  { %p153_p0 = scmp.ne.s32.totalorder %s16_s13, %s152_s14  ;;  %p158_p2 = scmp.lt.s32.totalorder %s152_s14, %s152_s14 }
   0x6   :  { %p159_p3 = por %p158_p2, %p157_p1 }
   0x8   :  { %p160_p4 = pnand %p159_p3, %p153_p0 }
   0xa   :  { %163 = shalt.err (!%p160_p4)
}
   0xb   :  { %s189_s15 = smov 128   ;;  %s190_s16 = smov 8  }
   0xc   :  { %21 = dma.hbm_to_vmem [thread:$0]  %s242_s0, 512, %s16_s13, [#allocation3], %s189_s15, %s189_s15, %s190_s16  }
   0xd   :  { %184 = dma.done.wait [#allocation3], 512  }
   0xe   :  { %185 = vsyncadd [#allocation3], 4294966784  ;;  %vm33_vm0 = vcmask 523264   ;;  %v29_v0 = vld [vmem:[#allocation2] sm:$0xff]  ;;  %v31_v1 = vld [vmem:[#allocation2 + $0x10] sm:$0xff] }
   0xf   :  { %v30_v2 = vld [vmem:[#allocation2 + $0x8] sm:$0xff]  ;;  %v34_v3 = vsel %vm33_vm0, %v29_v0, 0.0  ;;  %v40_v4 = vsel %vm33_vm0, %v31_v1, 0.0  ;;  %v32_v5 = vld [vmem:[#allocation2 + $0x18] sm:$0xff]  ;;  %v130_v41 = vld [vmem:[%s243_s1] ss:$0 sm:$0xff] }
  0x10   :  { %35 = vadd.xlane.f32.xlu0 %v34_v3  ;;  %41 = vadd.xlane.f32.xlu1 %v40_v4  ;;  %v37_v6 = vsel %vm33_vm0, %v30_v2, 0.0  ;;  %v43_v7 = vsel %vm33_vm0, %v32_v5, 0.0  ;;  %v131_v43 = vld [vmem:[%s244_s2] ss:$0 sm:$0xff]  ;;  %s191_s1 = smov [#allocation5]  }
  0x11   :  { %s118_s22 = sshll.u32 %s191_s1, 4  ;;  %s119_s22 = int_to_ptr.vmem [resolvable:$true] %s118_s22 }
  0x12   :  { %s164_s2 = scalar_lea.vmem %s119_s22, 512  ;;  %p169_p6 = scmp.lt.s32.totalorder %s119_s22, %s119_s22 }
  0x13   :  { %p165_p5 = scmp.ne.s32.totalorder %s119_s22, %s164_s2  ;;  %p170_p7 = scmp.lt.s32.totalorder %s164_s2, %s164_s2 }
  0x14   :  { %38 = vadd.xlane.f32.xlu0 %v37_v6  ;;  %44 = vadd.xlane.f32.xlu1 %v43_v7 }
  0x15   :  { %p171_p8 = por %p170_p7, %p169_p6 }
  0x17   :  { %p172_p9 = pnand %p171_p8, %p165_p5 }
  0x99   :  { %v36_v8 = vpop.xlane.xlu0 %35  ;;  %v42_v9 = vpop.xlane.xlu1 %41 }
  0x9a   :  { %v47_v10 = vmul.f32 0.015625, %v36_v8  ;;  %v49_v11 = vmul.f32 0.015625, %v42_v9 }
  0x9c   :  { %v51_v12 = vsub.f32 %v29_v0, %v47_v10  ;;  %v53_v13 = vsub.f32 %v31_v1, %v49_v11 }
  0x9d   :  { %v39_v14 = vpop.xlane.xlu0 %38  ;;  %v45_v15 = vpop.xlane.xlu1 %44 }
  0x9e   :  { %v48_v16 = vmul.f32 0.015625, %v39_v14  ;;  %v50_v17 = vmul.f32 0.015625, %v45_v15  ;;  %v55_v18 = vmul.f32 %v51_v12, %v51_v12  ;;  %v57_v19 = vmul.f32 %v53_v13, %v53_v13 }
  0xa0   :  { %v52_v20 = vsub.f32 %v30_v2, %v48_v16  ;;  %v54_v21 = vsub.f32 %v32_v5, %v50_v17  ;;  %v59_v22 = vsel %vm33_vm0, %v55_v18, 0.0  ;;  %v65_v23 = vsel %vm33_vm0, %v57_v19, 0.0 }
  0xa1   :  { %60 = vadd.xlane.f32.xlu0 %v59_v22 }
  0xa2   :  { %v56_v24 = vmul.f32 %v52_v20, %v52_v20  ;;  %v58_v25 = vmul.f32 %v54_v21, %v54_v21 }
  0xa4   :  { %v62_v26 = vsel %vm33_vm0, %v56_v24, 0.0  ;;  %v68_v27 = vsel %vm33_vm0, %v58_v25, 0.0 }
  0xa5   :  { %66 = vadd.xlane.f32.xlu0 %v65_v23  ;;  %63 = vadd.xlane.f32.xlu1 %v62_v26 }
  0xa9   :  { %69 = vadd.xlane.f32.xlu1 %v68_v27 }
 0x12a   :  { %v61_v28 = vpop.xlane.xlu0 %60 }
 0x12b   :  { %v71_v29 = vmul.f32 0.015625, %v61_v28 }
 0x12d   :  { %v75_v30 = vadd.f32 1e-05, %v71_v29 }
 0x12e   :  { %v64_v31 = vpop.xlane.xlu1 %63  ;;  %v67_v32 = vpop.xlane.xlu0 %66 }
 0x12f   :  { %136 = vrsqrt.f32 %v75_v30  ;;  %v72_v33 = vmul.f32 0.015625, %v64_v31  ;;  %v73_v34 = vmul.f32 0.015625, %v67_v32 }
 0x131   :  { %v76_v35 = vadd.f32 1e-05, %v72_v33  ;;  %v77_v36 = vadd.f32 1e-05, %v73_v34 }
 0x132   :  { %v70_v37 = vpop.xlane.xlu1 %69 }
 0x133   :  { %138 = vrsqrt.f32 %v76_v35  ;;  %v74_v38 = vmul.f32 0.015625, %v70_v37 }
 0x134   :  { %140 = vrsqrt.f32 %v77_v36 }
 0x135   :  { %v78_v39 = vadd.f32 1e-05, %v74_v38 }
 0x137   :  { %142 = vrsqrt.f32 %v78_v39 }
 0x13c   :  { %v137_v40 = vpop.eup %136 }
 0x13d   :  { %v83_v42 = vmul.f32 %v137_v40, %v51_v12 }
 0x13f   :  { %v94_v44 = vmul.f32 %v130_v41, %v83_v42 }
 0x140   :  { %v139_v45 = vpop.eup %138 }
 0x141   :  { %v141_v46 = vpop.eup %140  ;;  %v84_v47 = vmul.f32 %v139_v45, %v52_v20  ;;  %v105_v48 = vadd.f32 %v131_v43, %v94_v44 }
 0x142   :  { %v85_v49 = vmul.f32 %v141_v46, %v53_v13 }
 0x143   :  { %v95_v50 = vmul.f32 %v130_v41, %v84_v47  ;;  %109 = vst.msk [vmem:[#allocation5] sm:$0xff] %vm33_vm0, %v105_v48 }
 0x144   :  { %v143_v51 = vpop.eup %142  ;;  %v96_v52 = vmul.f32 %v130_v41, %v85_v49 }
 0x145   :  { %v86_v53 = vmul.f32 %v143_v51, %v54_v21  ;;  %v106_v54 = vadd.f32 %v131_v43, %v95_v50 }
 0x146   :  { %v107_v55 = vadd.f32 %v131_v43, %v96_v52 }
 0x147   :  { %v97_v56 = vmul.f32 %v130_v41, %v86_v53  ;;  %110 = vst.msk [vmem:[#allocation5 + $0x8] sm:$0xff] %vm33_vm0, %v106_v54 }
 0x148   :  { %111 = vst.msk [vmem:[#allocation5 + $0x10] sm:$0xff] %vm33_vm0, %v107_v55 }
 0x149   :  { %v108_v57 = vadd.f32 %v131_v43, %v97_v56 }
 0x14b   :  { %112 = vst.msk [vmem:[#allocation5 + $0x18] sm:$0xff] %vm33_vm0, %v108_v57 }
 0x14c   :  { %175 = shalt.err (!%p172_p9)
}
 0x14d   :  { %124 = dma.vmem_to_hbm [thread:$0]  %s119_s22, 512, %s245_s3, [#allocation4], %s189_s15, %s189_s15, %s190_s16  }
 0x14e   :  { %186 = dma.done.wait [#allocation4], 512  }
 0x14f   :  { %187 = vsyncadd [#allocation4], 4294966784 }
 0x150   :  { %128 = vsyncpa [#allocation3], 1 }
 0x151   :  { %129 = vsyncpa [#allocation4], 1 }

</bundles_post_ra>
